<compile_context>
chip_gen: v7x
topology: tpu7x:2x2x1
jax: 0.10.0
libtpu: 0.0.40
codegen_flags: <defaults>
</compile_context>

<pallas_src>
import functools
import math

import jax
import jax.numpy as jnp
from jax import lax
from jax.experimental import pallas as pl
from jax.experimental.pallas import tpu as pltpu


_INV_SQRT2 = 1.0 / math.sqrt(2.0)


def _round_up(v, m):
    return ((v + m - 1) // m) * m


def _gelu(h, approximate):
    if approximate:
        # tanh GELU: transcendental runs on the EUP slot (otherwise idle here)
        # instead of a long erf polynomial on the VALU.  ~1e-3 delta vs erf.
        c = 0.7978845608028654  # sqrt(2/pi)
        u = c * (h + 0.044715 * (h * h * h))
        return 0.5 * h * (1.0 + jnp.tanh(u))
    # PyTorch nn.GELU() default: 0.5 * x * (1 + erf(x / sqrt(2))); erf in f32.
    hf = h.astype(jnp.float32)
    return (0.5 * hf * (1.0 + lax.erf(hf * _INV_SQRT2))).astype(h.dtype)


def _make_mlp_kernel(num_linear, approximate_gelu):
    """Kernel refs (inputs batch-major, activations feature-major / batch-on-lanes):

         t_ref:   (TB, t_dim)   f32
         x_ref:   (TB, x_dim)   f32
         w0t_ref: (H0, t_dim)   mm dtype   first-layer columns hitting t
         w0x_ref: (H0, x_dim)   mm dtype   first-layer columns hitting x
         b0_ref:  (H0, 1)       act dtype (f32 if it is the final bias)
         (w_i (H_i, H_{i-1}) mm dtype, b_i (H_i, 1) act/f32) for i = 1..L-1
         out_ref: (out_dim, TB) f32

       Matmul/activation dtypes are inferred from the prepared-parameter dtypes
       (see prepare_mynn_params), so no extra casts are emitted when activations
       already live in the MXU operand dtype.
    """
    # Contract dim 1 of both operands:  (H, K) x (TB, K) -> (H, TB)
    cdims = (((1,), (1,)), ((), ()))

    def kernel(*refs):
        t_ref, x_ref = refs[0], refs[1]
        out_ref = refs[-1]
        p = refs[2:-1]
        w0t_ref, w0x_ref, b0_ref = p[0], p[1], p[2]

        mm_dtype = w0x_ref.dtype

        # ---- first layer: concat(t, x) fused as two small dots, batch on lanes ----
        z = lax.dot_general(w0x_ref[...], x_ref[...].astype(mm_dtype), cdims,
                            preferred_element_type=jnp.float32)
        z = z + lax.dot_general(w0t_ref[...], t_ref[...].astype(mm_dtype), cdims,
                                preferred_element_type=jnp.float32)

        if num_linear == 1:
            out_ref[...] = (z + b0_ref[...].astype(jnp.float32)).astype(out_ref.dtype)
            return

        # bias add + GELU in the activation dtype (bf16 on v6e/v7x, f32 on v5e)
        h = _gelu(z.astype(b0_ref.dtype) + b0_ref[...], approximate_gelu)

        # ---- remaining layers (PyTorch (out, in) weight layout, no transposes) ----
        for i in range(1, num_linear):
            w_ref = p[3 + 2 * (i - 1)]
            b_ref = p[4 + 2 * (i - 1)]
            z = jnp.dot(w_ref[...], h.astype(w_ref.dtype),
                        preferred_element_type=jnp.float32)
            if i < num_linear - 1:
                h = _gelu(z.astype(b_ref.dtype) + b_ref[...], approximate_gelu)
            else:
                out_ref[...] = (z + b_ref[...].astype(jnp.float32)).astype(out_ref.dtype)

    return kernel


def default_bf16_activations():
    """bf16 bias-add/GELU only where the VPU/EUP have native bf16 (v6e / v7x)."""
    try:
        kind = jax.devices()[0].device_kind.lower()
    except Exception:
        return False
    return ("v6" in kind) or ("v7" in kind)


def prepare_mynn_params(params, *, t_dim=1, use_bf16=True, bf16_activations=None):
    """Hoist all per-call parameter plumbing (w0 split into t/x columns, dtype
    casts, bias reshapes) out of the forward.  Call once, reuse across steps.

    params: tuple of (W (out_features, in_features), b (out_features,)) in
    PyTorch nn.Linear layout.  Returns a flat tuple of kernel-ready arrays."""
    if bf16_activations is None:
        bf16_activations = default_bf16_activations()
    num_linear = len(params)
    mm_dtype = jnp.bfloat16 if use_bf16 else jnp.float32
    act_dtype = jnp.bfloat16 if (use_bf16 and bf16_activations) else jnp.float32

    w0, b0 = params[0]
    prepared = [
        jnp.asarray(w0[:, :t_dim], mm_dtype),                        # (H0, t_dim)
        jnp.asarray(w0[:, t_dim:], mm_dtype),                        # (H0, x_dim)
        jnp.asarray(jnp.reshape(b0, (-1, 1)),
                    act_dtype if num_linear > 1 else jnp.float32),   # (H0, 1)
    ]
    for i, (w, b) in enumerate(params[1:], start=1):
        prepared.append(jnp.asarray(w, mm_dtype))
        prepared.append(jnp.asarray(jnp.reshape(b, (-1, 1)),
                                    act_dtype if i < num_linear - 1 else jnp.float32))
    return tuple(prepared)


@functools.partial(
    jax.jit,
    static_argnames=("approximate_gelu", "max_batch_tile", "feature_major_output"))
def mynn_forward(t, x, prepared_params, *, approximate_gelu=True,
                 max_batch_tile=8192, feature_major_output=False):
    """t: (B, t_dim), x: (B, x_dim); prepared_params from prepare_mynn_params().
    Returns (B, out_dim) f32 (PyTorch layout).  Pass feature_major_output=True to
    get the lane-dense (out_dim, B) kernel output directly and fold the final
    transpose into the consumer."""
    t = jnp.asarray(t, jnp.float32)
    x = jnp.asarray(x, jnp.float32)
    B, t_dim = t.shape
    x_dim = x.shape[1]
    num_linear = (len(prepared_params) - 3) // 2 + 1
    out_dim = (prepared_params[0].shape[0] if num_linear == 1
               else prepared_params[-2].shape[0])

    # Batch tile: whole batch when tiny; otherwise a lane-aligned (x128) tile,
    # capped at max_batch_tile, sized for >= 2 grid steps so the "parallel"
    # batch axis can shard across v7x's two TensorCores.  Streamed blocks are
    # only a few hundred KiB even at TB=8192, so VMEM is never the constraint.
    if B <= 128:
        tb = B
    else:
        tb = max(128, min(max_batch_tile, _round_up(pl.cdiv(B, 2), 128)))
    grid = (pl.cdiv(B, tb),)

    in_specs = [
        pl.BlockSpec((tb, t_dim), lambda i: (i, 0)),
        pl.BlockSpec((tb, x_dim), lambda i: (i, 0)),
    ]
    # Weights / biases: full-array blocks with a constant block index, so the
    # pipeline keeps them VMEM-resident instead of re-DMAing every grid step.
    for a in prepared_params:
        in_specs.append(pl.BlockSpec(a.shape, lambda i: (0, 0)))

    out_spec = pl.BlockSpec((out_dim, tb), lambda i: (0, i))

    kernel = _make_mlp_kernel(num_linear, approximate_gelu)

    out_T = pl.pallas_call(
        kernel,
        out_shape=jax.ShapeDtypeStruct((out_dim, B), jnp.float32),
        grid_spec=pltpu.PrefetchScalarGridSpec(
            num_scalar_prefetch=0,
            grid=grid,
            in_specs=in_specs,
            out_specs=out_spec,
        ),
        compiler_params=pltpu.CompilerParams(
            # Batch tiles are independent -> shard across v7x's 2 TensorCores.
            dimension_semantics=("parallel",),
        ),
    )(t, x, *prepared_params)

    if feature_major_output:
        return out_T
    return jnp.transpose(out_T)            # back to PyTorch's (B, out_dim)


def init_mynn_params(key, layers):
    """PyTorch nn.Linear default init: U(-1/sqrt(fan_in), 1/sqrt(fan_in)).
    W stored as (out_features, in_features), exactly like PyTorch."""
    params = []
    for i in range(len(layers) - 1):
        fan_in, fan_out = layers[i], layers[i + 1]
        key, kw, kb = jax.random.split(key, 3)
        bound = 1.0 / math.sqrt(fan_in)
        w = jax.random.uniform(kw, (fan_out, fan_in), jnp.float32, -bound, bound)
        b = jax.random.uniform(kb, (fan_out,), jnp.float32, -bound, bound)
        params.append((w, b))
    return tuple(params)


def mynn_reference(t, x, params):
    """Exact PyTorch-equivalent forward in f32 (HIGHEST-precision matmuls,
    erf GELU): inputs = cat((t, x), 1); hidden = GELU(Linear(h)); out = Linear."""
    h = jnp.concatenate(
        [jnp.asarray(t, jnp.float32), jnp.asarray(x, jnp.float32)], axis=1)
    n = len(params)
    for i, (w, b) in enumerate(params):
        h = jnp.dot(h, w.T, precision=lax.Precision.HIGHEST,
                    preferred_element_type=jnp.float32) + b
        if i < n - 1:
            h = 0.5 * h * (1.0 + lax.erf(h * _INV_SQRT2))
    return h


if __name__ == "__main__":
    # layers = [t_dim + x_dim, hidden, hidden, out_dim]
    t_dim, x_dim = 1, 4
    layers = [t_dim + x_dim, 32, 32, 2]
    params = init_mynn_params(jax.random.PRNGKey(0), layers)

    key = jax.random.PRNGKey(0)
    key, kt, kx = jax.random.split(key, 3)
    batch = 8                              # toy FBSDE batch
    t = jax.random.normal(kt, (batch, t_dim), jnp.float32)
    x = jax.random.normal(kx, (batch, x_dim), jnp.float32)
    ref = mynn_reference(t, x, params)

    # --- 1) exact-parity configuration: f32 matmuls + erf GELU (tight check) ---
    exact_params = prepare_mynn_params(params, t_dim=t_dim,
                                       use_bf16=False, bf16_activations=False)
    out_exact = jax.block_until_ready(
        mynn_forward(t, x, exact_params, approximate_gelu=False))
    assert out_exact.shape == (batch, layers[-1])
    err_exact = float(jnp.max(jnp.abs(out_exact - ref)))
    assert err_exact < 5e-3, f"exact-path max abs err = {err_exact}"

    # --- 2) default perf configuration: bf16 MXU operands, bf16 + tanh GELU on
    #        v6e/v7x (f32 activations kept on v5e).  Sanity check vs exact f32. ---
    perf_params = prepare_mynn_params(params, t_dim=t_dim)   # prepared once, reused
    out_small = jax.block_until_ready(mynn_forward(t, x, perf_params))
    assert out_small.shape == (batch, layers[-1])
    err_small = float(jnp.max(jnp.abs(out_small - ref)))
    assert err_small < 1e-1, f"perf-path (B={batch}) max abs err = {err_small}"

    # --- 3) larger batch: lane-aligned tiles with >=2 grid steps (TB=2048,
    #        grid=(2,)) so both v7x TensorCores engage; weights stay VMEM-resident. ---
    big_b = 4096
    key, kt2, kx2 = jax.random.split(key, 3)
    t_big = jax.random.normal(kt2, (big_b, t_dim), jnp.float32)
    x_big = jax.random.normal(kx2, (big_b, x_dim), jnp.float32)
    out_big = jax.block_until_ready(mynn_forward(t_big, x_big, perf_params))
    ref_big = mynn_reference(t_big, x_big, params)
    assert out_big.shape == (big_b, layers[-1])
    err_big = float(jnp.max(jnp.abs(out_big - ref_big)))
    assert err_big < 1e-1, f"perf-path (B={big_b}) max abs err = {err_big}"

    print("KERNEL_OK")
</pallas_src>

<mosaic_0001>
module attributes {stable_mosaic.version = 11 : i64} {
  func.func @kernel(%arg0: i32, %arg1: memref<8x1xf32, #tpu.memory_space<vmem>>, %arg2: memref<8x4xf32, #tpu.memory_space<vmem>>, %arg3: memref<32x1xf32, #tpu.memory_space<vmem>>, %arg4: memref<32x4xf32, #tpu.memory_space<vmem>>, %arg5: memref<32x1xf32, #tpu.memory_space<vmem>>, %arg6: memref<32x32xf32, #tpu.memory_space<vmem>>, %arg7: memref<32x1xf32, #tpu.memory_space<vmem>>, %arg8: memref<2x32xf32, #tpu.memory_space<vmem>>, %arg9: memref<2x1xf32, #tpu.memory_space<vmem>>, %arg10: memref<2x8xf32, #tpu.memory_space<vmem>>) attributes {dimension_semantics = [#tpu.dimension_semantics<parallel>], iteration_bounds = array<i64: 1>, scalar_prefetch = 0 : i64, scratch_operands = 0 : i64, tpu.core_type = #tpu.core_type<tc>, window_params = [{transform_indices = @transform_0, window_bounds = array<i64: 8, 1>}, {transform_indices = @transform_1, window_bounds = array<i64: 8, 4>}, {pipeline_mode = #tpu.pipeline_mode<synchronous>, transform_indices = @transform_2, window_bounds = array<i64: 32, 1>}, {pipeline_mode = #tpu.pipeline_mode<synchronous>, transform_indices = @transform_3, window_bounds = array<i64: 32, 4>}, {pipeline_mode = #tpu.pipeline_mode<synchronous>, transform_indices = @transform_4, window_bounds = array<i64: 32, 1>}, {pipeline_mode = #tpu.pipeline_mode<synchronous>, transform_indices = @transform_5, window_bounds = array<i64: 32, 32>}, {pipeline_mode = #tpu.pipeline_mode<synchronous>, transform_indices = @transform_6, window_bounds = array<i64: 32, 1>}, {pipeline_mode = #tpu.pipeline_mode<synchronous>, transform_indices = @transform_7, window_bounds = array<i64: 2, 32>}, {pipeline_mode = #tpu.pipeline_mode<synchronous>, transform_indices = @transform_8, window_bounds = array<i64: 2, 1>}, {transform_indices = @transform_9, window_bounds = array<i64: 2, 8>}]} {
    %c0 = arith.constant 0 : index
    %c0_0 = arith.constant 0 : index
    %0 = vector.load %arg4[%c0, %c0_0] : memref<32x4xf32, #tpu.memory_space<vmem>>, vector<32x4xf32>
    %c0_1 = arith.constant 0 : index
    %c0_2 = arith.constant 0 : index
    %1 = vector.load %arg2[%c0_1, %c0_2] : memref<8x4xf32, #tpu.memory_space<vmem>>, vector<8x4xf32>
    %cst = arith.constant dense<0.000000e+00> : vector<32x8xf32>
    %2 = tpu.matmul %0, %1, %cst {dimension_numbers = #tpu.dot_dimension_numbers<[1], [1], [0], [0], [0, 0, 1, 0], [], []>} : vector<32x4xf32>, vector<8x4xf32>, vector<32x8xf32> -> vector<32x8xf32>
    %c0_3 = arith.constant 0 : index
    %c0_4 = arith.constant 0 : index
    %3 = vector.load %arg3[%c0_3, %c0_4] : memref<32x1xf32, #tpu.memory_space<vmem>>, vector<32x1xf32>
    %c0_5 = arith.constant 0 : index
    %c0_6 = arith.constant 0 : index
    %4 = vector.load %arg1[%c0_5, %c0_6] : memref<8x1xf32, #tpu.memory_space<vmem>>, vector<8x1xf32>
    %cst_7 = arith.constant dense<0.000000e+00> : vector<32x8xf32>
    %5 = tpu.matmul %3, %4, %cst_7 {dimension_numbers = #tpu.dot_dimension_numbers<[1], [1], [0], [0], [0, 0, 1, 0], [], []>} : vector<32x1xf32>, vector<8x1xf32>, vector<32x8xf32> -> vector<32x8xf32>
    %6 = arith.addf %2, %5 : vector<32x8xf32>
    %c0_8 = arith.constant 0 : index
    %c0_9 = arith.constant 0 : index
    %7 = vector.load %arg5[%c0_8, %c0_9] : memref<32x1xf32, #tpu.memory_space<vmem>>, vector<32x1xf32>
    %8 = vector.broadcast %7 : vector<32x1xf32> to vector<32x8xf32>
    %9 = arith.addf %6, %8 : vector<32x8xf32>
    %cst_10 = arith.constant 5.000000e-01 : f32
    %10 = vector.broadcast %cst_10 : f32 to vector<32x8xf32>
    %11 = arith.mulf %10, %9 : vector<32x8xf32>
    %cst_11 = arith.constant 0.707106769 : f32
    %12 = vector.broadcast %cst_11 : f32 to vector<32x8xf32>
    %13 = arith.mulf %9, %12 : vector<32x8xf32>
    %14 = math.erf %13 : vector<32x8xf32>
    %cst_12 = arith.constant 1.000000e+00 : f32
    %15 = vector.broadcast %cst_12 : f32 to vector<32x8xf32>
    %16 = arith.addf %15, %14 : vector<32x8xf32>
    %17 = arith.mulf %11, %16 : vector<32x8xf32>
    %c0_13 = arith.constant 0 : index
    %c0_14 = arith.constant 0 : index
    %18 = vector.load %arg6[%c0_13, %c0_14] : memref<32x32xf32, #tpu.memory_space<vmem>>, vector<32x32xf32>
    %cst_15 = arith.constant dense<0.000000e+00> : vector<32x8xf32>
    %19 = tpu.matmul %18, %17, %cst_15 {dimension_numbers = #tpu.dot_dimension_numbers<[1], [0], [0], [1], [0, 0, 1, 1], [], []>} : vector<32x32xf32>, vector<32x8xf32>, vector<32x8xf32> -> vector<32x8xf32>
    %c0_16 = arith.constant 0 : index
    %c0_17 = arith.constant 0 : index
    %20 = vector.load %arg7[%c0_16, %c0_17] : memref<32x1xf32, #tpu.memory_space<vmem>>, vector<32x1xf32>
    %21 = vector.broadcast %20 : vector<32x1xf32> to vector<32x8xf32>
    %22 = arith.addf %19, %21 : vector<32x8xf32>
    %cst_18 = arith.constant 5.000000e-01 : f32
    %23 = vector.broadcast %cst_18 : f32 to vector<32x8xf32>
    %24 = arith.mulf %23, %22 : vector<32x8xf32>
    %cst_19 = arith.constant 0.707106769 : f32
    %25 = vector.broadcast %cst_19 : f32 to vector<32x8xf32>
    %26 = arith.mulf %22, %25 : vector<32x8xf32>
    %27 = math.erf %26 : vector<32x8xf32>
    %cst_20 = arith.constant 1.000000e+00 : f32
    %28 = vector.broadcast %cst_20 : f32 to vector<32x8xf32>
    %29 = arith.addf %28, %27 : vector<32x8xf32>
    %30 = arith.mulf %24, %29 : vector<32x8xf32>
    %c0_21 = arith.constant 0 : index
    %c0_22 = arith.constant 0 : index
    %31 = vector.load %arg8[%c0_21, %c0_22] : memref<2x32xf32, #tpu.memory_space<vmem>>, vector<2x32xf32>
    %cst_23 = arith.constant dense<0.000000e+00> : vector<2x8xf32>
    %32 = tpu.matmul %31, %30, %cst_23 {dimension_numbers = #tpu.dot_dimension_numbers<[1], [0], [0], [1], [0, 0, 1, 1], [], []>} : vector<2x32xf32>, vector<32x8xf32>, vector<2x8xf32> -> vector<2x8xf32>
    %c0_24 = arith.constant 0 : index
    %c0_25 = arith.constant 0 : index
    %33 = vector.load %arg9[%c0_24, %c0_25] : memref<2x1xf32, #tpu.memory_space<vmem>>, vector<2x1xf32>
    %34 = vector.broadcast %33 : vector<2x1xf32> to vector<2x8xf32>
    %35 = arith.addf %32, %34 : vector<2x8xf32>
    %c0_26 = arith.constant 0 : index
    %c0_27 = arith.constant 0 : index
    %36 = vector.load %arg10[%c0_26, %c0_27] : memref<2x8xf32, #tpu.memory_space<vmem>>, vector<2x8xf32>
    tpu.vector_store %arg10[%c0_26, %c0_27], %35 {strides = array<i32>} : memref<2x8xf32, #tpu.memory_space<vmem>>, vector<2x8xf32>,
    return
  }
  func.func @transform_0(%arg0: i32) -> (i32, i32) {
    %c0_i32 = arith.constant 0 : i32
    %c0_i32_0 = arith.constant 0 : i32
    return %arg0, %c0_i32 : i32, i32
  }
  func.func @transform_1(%arg0: i32) -> (i32, i32) {
    %c0_i32 = arith.constant 0 : i32
    %c0_i32_0 = arith.constant 0 : i32
    return %arg0, %c0_i32 : i32, i32
  }
  func.func @transform_2(%arg0: i32) -> (i32, i32) {
    %c0_i32 = arith.constant 0 : i32
    %c0_i32_0 = arith.constant 0 : i32
    %c0_i32_1 = arith.constant 0 : i32
    return %c0_i32, %c0_i32_0 : i32, i32
  }
  func.func @transform_3(%arg0: i32) -> (i32, i32) {
    %c0_i32 = arith.constant 0 : i32
    %c0_i32_0 = arith.constant 0 : i32
    %c0_i32_1 = arith.constant 0 : i32
    return %c0_i32, %c0_i32_0 : i32, i32
  }
  func.func @transform_4(%arg0: i32) -> (i32, i32) {
    %c0_i32 = arith.constant 0 : i32
    %c0_i32_0 = arith.constant 0 : i32
    %c0_i32_1 = arith.constant 0 : i32
    return %c0_i32, %c0_i32_0 : i32, i32
  }
  func.func @transform_5(%arg0: i32) -> (i32, i32) {
    %c0_i32 = arith.constant 0 : i32
    %c0_i32_0 = arith.constant 0 : i32
    %c0_i32_1 = arith.constant 0 : i32
    return %c0_i32, %c0_i32_0 : i32, i32
  }
  func.func @transform_6(%arg0: i32) -> (i32, i32) {
    %c0_i32 = arith.constant 0 : i32
    %c0_i32_0 = arith.constant 0 : i32
    %c0_i32_1 = arith.constant 0 : i32
    return %c0_i32, %c0_i32_0 : i32, i32
  }
  func.func @transform_7(%arg0: i32) -> (i32, i32) {
    %c0_i32 = arith.constant 0 : i32
    %c0_i32_0 = arith.constant 0 : i32
    %c0_i32_1 = arith.constant 0 : i32
    return %c0_i32, %c0_i32_0 : i32, i32
  }
  func.func @transform_8(%arg0: i32) -> (i32, i32) {
    %c0_i32 = arith.constant 0 : i32
    %c0_i32_0 = arith.constant 0 : i32
    %c0_i32_1 = arith.constant 0 : i32
    return %c0_i32, %c0_i32_0 : i32, i32
  }
  func.func @transform_9(%arg0: i32) -> (i32, i32) {
    %c0_i32 = arith.constant 0 : i32
    %c0_i32_0 = arith.constant 0 : i32
    return %c0_i32, %arg0 : i32, i32
  }
}

</mosaic_0001>

<bundles_post_ra>
// kernel: mynn_forward.1
= control target key start
LH: loop header
LB: loop body
LE: loop exit
PB: predicated region body
PF: predicated region fallthrough
CT: control target
= control target key end

     0   :  { %vm43_vm0 = vcmask 7168   ;;  %vm144_vm1 = vcmask 31744   ;;  %v679_v4 = vmov 0   ;;  %s835_s0 = inlined_call_operand.vmem [shape: f32[8,1], index: 0, kind: input, shape index: {}]   ;;  %s836_s1 = inlined_call_operand.vmem [shape: f32[8,4], index: 1, kind: input, shape index: {}]   ;;  %s837_s2 = inlined_call_operand.vmem [shape: f32[32,1], index: 2, kind: input, shape index: {}]   ;;  %s838_s3 = inlined_call_operand.vmem [shape: f32[32,4], index: 3, kind: input, shape index: {}]   ;;  %s839_s4 = inlined_call_operand.vmem [shape: f32[32,1], index: 4, kind: input, shape index: {}]   ;;  %s840_s5 = inlined_call_operand.vmem [shape: f32[32,32], index: 5, kind: input, shape index: {}]   ;;  %s841_s6 = inlined_call_operand.vmem [shape: f32[32,1], index: 6, kind: input, shape index: {}]   ;;  %s842_s7 = inlined_call_operand.vmem [shape: f32[2,32], index: 7, kind: input, shape index: {}]   ;;  %s843_s8 = inlined_call_operand.vmem [shape: f32[2,1], index: 8, kind: input, shape index: {}]   ;;  %s844_s9 = inlined_call_operand.hbm [shape: f32[2,8], index: 9, kind: output, shape index: {}]  }
   0x1   :  { %v42_v0 = vld [vmem:[%s835_s0] sm:$0xff]  ;;  %v39_v3 = vld [vmem:[%s837_s2 + $0x8] sm:$0xff]  ;;  %637 = vset.pattern.permute.xlu0 %v679_v4  ;;  %v40_v5 = vld [vmem:[%s837_s2 + $0x10] sm:$0xff]  ;;  %638 = vset.pattern.permute.xlu1 %v679_v4 }
   0x2   :  { %v38_v1 = vld [vmem:[%s837_s2] sm:$0xff]  ;;  %573 = vmatprep.subr.msk.mxu0 %vm43_vm0, %v42_v0  ;;  %v247_v7 = vld [vmem:[%s839_s4 + $0x10] sm:$0xff]  ;;  %v246_v8 = vld [vmem:[%s839_s4 + $0x8] sm:$0xff] }
   0x3   :  { %575 = vmatprep.mubr.msk.f32.mxu0 %vm43_vm0, %v38_v1  ;;  %v37_v2 = vld [vmem:[%s836_s1] sm:$0xff]  ;;  %574 = vmatpush3.xpose.msk.msra.mxu0 %vm43_vm0, %v42_v0  ;;  %v41_v9 = vld [vmem:[%s837_s2 + $0x18] sm:$0xff] }
   0x4   :  { %581 = vmatprep.subr.msk.mxu0 %vm144_vm1, %v37_v2  ;;  %v245_v6 = vld [vmem:[%s839_s4] sm:$0xff]  ;;  %261 = vperm.xlu1 %638, %v247_v7   ;;  %v248_v10 = vld [vmem:[%s839_s4 + $0x18] sm:$0xff] }
   0x5   :  { %251 = vperm.xlu0 %637, %v245_v6  }
   0x6   :  { %576 = vmatmul.mubr.msk.f32.vlgmr.msra.gmra.mrb[0].mxu0 %vm43_vm0, %v39_v3 }
   0x7   :  { %582 = vmatpush3.xpose.msk.msra.mxu0 %vm144_vm1, %v37_v2  ;;  %578 = vmatprep.mubr.msk.f32.mxu0 %vm43_vm0, %v40_v5 }
   0x8   :  { %14 = vsyncpa [#allocation3], 0  ;;  %v33_v11 = vld [vmem:[%s838_s3] sm:$0xff]  ;;  %266 = vperm.xlu1 %638, %v248_v10   ;;  %v34_v13 = vld [vmem:[%s838_s3 + $0x8] sm:$0xff]  ;;  %vm321_vm2 = vcmask 261120   ;;  %v680_v58 = vmov 0.0|0.0  }
   0x9   :  { %256 = vperm.xlu0 %637, %v246_v8   ;;  %v297_v12 = vld [vmem:[%s841_s6] sm:$0xff]  ;;  %v298_v14 = vld [vmem:[%s841_s6 + $0x8] sm:$0xff]  ;;  %v35_v15 = vld [vmem:[%s838_s3 + $0x10] sm:$0xff]  ;;  %vm681_vm3 = vmmov 0   ;;  %v682_v59 = vmov 0.0   ;;  %s683_s26 = smov [#allocation2]  }
   0xa   :  { %579 = vmatmul.mubr.msk.f32.gmra.mrb[2].mxu0 %vm43_vm0, %v41_v9  ;;  %v299_v16 = vld [vmem:[%s841_s6 + $0x10] sm:$0xff]  ;;  %v36_v17 = vld [vmem:[%s838_s3 + $0x18] sm:$0xff]  ;;  %v440_v19 = vld [vmem:[%s843_s8] sm:$0x3]  ;;  %s527_s27 = sshll.u32 %s683_s26, 4  ;;  %vm519_vm4 = vcmask 58368   ;;  %s528_s27 = int_to_ptr.vmem [resolvable:$true] %s527_s27 }
   0xb   :  { %583 = vmatprep.mubr.msk.f32.mxu0 %vm144_vm1, %v33_v11  ;;  %v300_v18 = vld [vmem:[%s841_s6 + $0x18] sm:$0xff]  ;;  %v293_v20 = vld [vmem:[%s840_s5] sm:$0xff]  ;;  %v294_v55 = vld [vmem:[%s840_s5 + $0x8] sm:$0xff]  ;;  %s655_s28 = scalar_lea.vmem %s528_s27, 32  ;;  %p660_p1 = scmp.lt.s32.totalorder %s528_s27, %s528_s27 }
   0xc   :  { %308 = vperm.xlu1 %638, %v298_v14   ;;  %597 = vmatprep.mubr.msk.f32.mxu1 %vm321_vm2, %v293_v20  ;;  %v295_v56 = vld [vmem:[%s840_s5 + $0x10] sm:$0xff]  ;;  %v296_v57 = vld [vmem:[%s840_s5 + $0x18] sm:$0xff]  ;;  %p656_p0 = scmp.ne.s32.totalorder %s528_s27, %s655_s28  ;;  %p661_p2 = scmp.lt.s32.totalorder %s655_s28, %s655_s28 }
   0xd   :  { %303 = vperm.xlu0 %637, %v297_v12  }
   0xe   :  { %584 = vmatmul.mubr.msk.f32.vlgmr.msra.gmra.mrb[0].mxu0 %vm144_vm1, %v34_v13  ;;  %p662_p3 = por %p661_p2, %p660_p1 }
   0xf   :  { %586 = vmatprep.mubr.msk.f32.mxu0 %vm144_vm1, %v35_v15 }
  0x10   :  { %318 = vperm.xlu1 %638, %v300_v18   ;;  %p663_p4 = pnand %p662_p3, %p656_p0 }
  0x11   :  { %313 = vperm.xlu0 %637, %v299_v16  }
  0x12   :  { %587 = vmatmul.mubr.msk.f32.gmra.mrb[2].mxu0 %vm144_vm1, %v36_v17 }
  0x15   :  { %443 = vperm.xlu0 %637, %v440_v19  }
  0x83   :  { %v262_v22 = vpop.permute.xlu1 %261 }
  0x84   :  { %v252_v21 = vpop.permute.xlu0 %251 }
  0x87   :  { %v267_v29 = vpop.permute.xlu1 %266 }
  0x88   :  { %v257_v23 = vpop.permute.xlu0 %256 }
  0x8b   :  { %v309_v60 = vpop.permute.xlu1 %308 }
  0x8c   :  { %v304_v61 = vpop.permute.xlu0 %303 }
  0x8f   :  { %v319_v3 = vpop.permute.xlu1 %318 }
  0x90   :  { %v314_v6 = vpop.permute.xlu0 %313 }
  0xe1   :  { %v585_v24 = vpop.f32.mrb[0].mxu0 }
  0xe2   :  { %v270_v25 = vadd.f32 %v585_v24, %v257_v23  ;;  %v226_v26 = vpop.f32.mrb[1].mxu0 }
  0xe3   :  { %v269_v27 = vadd.f32 %v252_v21, %v226_v26 }
  0xe4   :  { %v278_v28 = vmul.f32 0.70710677, %v270_v25  ;;  %v274_v39 = vmul.f32 0.5, %v270_v25 }
  0xe5   :  { %v277_v30 = vmul.f32 0.70710677, %v269_v27  ;;  %v588_v31 = vpop.f32.mrb[2].mxu0  ;;  %v273_v41 = vmul.f32 0.5, %v269_v27 }
  0xe6   :  { %639 = verf.f32 %v278_v28  ;;  %v272_v32 = vadd.f32 %v588_v31, %v267_v29  ;;  %v236_v33 = vpop.f32.mrb[3].mxu0  ;;  %v444_v31 = vpop.permute.xlu0 %443 }
  0xe7   :  { %641 = verf.f32 %v277_v30  ;;  %v271_v34 = vadd.f32 %v262_v22, %v236_v33  ;;  %v439_v30 = vld [vmem:[%s842_s7] sm:$0x3] }
  0xe8   :  { %v280_v35 = vmul.f32 0.70710677, %v272_v32  ;;  %v276_v47 = vmul.f32 0.5, %v272_v32 }
  0xe9   :  { %v279_v36 = vmul.f32 0.70710677, %v271_v34  ;;  %v275_v49 = vmul.f32 0.5, %v271_v34 }
  0xea   :  { %643 = verf.f32 %v280_v35 }
  0xeb   :  { %645 = verf.f32 %v279_v36 }
  0xf0   :  { %v640_v37 = vpop.eup %639 }
  0xf1   :  { %v642_v38 = vpop.eup %641  ;;  %v286_v40 = vadd.f32 1.0, %v640_v37 }
  0xf2   :  { %v285_v42 = vadd.f32 1.0, %v642_v38 }
  0xf3   :  { %v290_v43 = vmul.f32 %v286_v40, %v274_v39 }
  0xf4   :  { %v644_v44 = vpop.eup %643  ;;  %v289_v45 = vmul.f32 %v285_v42, %v273_v41 }
  0xf5   :  { %v646_v46 = vpop.eup %645  ;;  %v288_v48 = vadd.f32 1.0, %v644_v44 }
  0xf6   :  { %v287_v50 = vadd.f32 1.0, %v646_v46  ;;  %v614_v51 = vpack.c.bf16 %v290_v43, %v289_v45 }
  0xf7   :  { %v292_v52 = vmul.f32 %v288_v48, %v276_v47 }
  0xf8   :  { %v291_v53 = vmul.f32 %v287_v50, %v275_v49  ;;  %615 = vmatprep.subr.bf16.mxu1 %v614_v51 }
  0xf9   :  { %617 = vmatpush3.bf16.msra.mxu1 %v614_v51 }
  0xfa   :  { %v618_v54 = vpack.c.bf16 %v292_v52, %v291_v53 }
  0xfc   :  { %619 = vmatprep.subr.bf16.mxu1 %v618_v54 }
  0xfd   :  { %621 = vmatpush3.bf16.msra.mxu1 %v618_v54 }
  0xfe   :  { %622 = vmatprep.subr.bf16.mxu1 %v680_v58 }
 0x100   :  { %598 = vmatmul.mubr.msk.f32.vlgmr.msra.gmra.mrb[0].mxu1 %vm321_vm2, %v294_v55 }
 0x101   :  { %600 = vmatprep.mubr.msk.f32.mxu1 %vm321_vm2, %v295_v56 }
 0x104   :  { %601 = vmatmul.mubr.msk.f32.gmra.mrb[2].mxu1 %vm321_vm2, %v296_v57 }
 0x105   :  { %611 = vmatprep.mubr.msk.f32.mxu1 %vm681_vm3, %v682_v59 }
 0x1d3   :  { %v599_v62 = vpop.f32.mrb[0].mxu1 }
 0x1d4   :  { %v406_v63 = vadd.f32 %v599_v62, %v309_v60  ;;  %v400_v0 = vpop.f32.mrb[1].mxu1 }
 0x1d5   :  { %v401_v1 = vadd.f32 %v400_v0, %v304_v61 }
 0x1d6   :  { %v424_v2 = vmul.f32 0.70710677, %v406_v63  ;;  %v420_v14 = vmul.f32 0.5, %v406_v63 }
 0x1d7   :  { %v423_v4 = vmul.f32 0.70710677, %v401_v1  ;;  %v602_v5 = vpop.f32.mrb[2].mxu1  ;;  %v419_v16 = vmul.f32 0.5, %v401_v1 }
 0x1d8   :  { %647 = verf.f32 %v424_v2  ;;  %v416_v7 = vadd.f32 %v602_v5, %v319_v3  ;;  %v410_v8 = vpop.f32.mrb[3].mxu1 }
 0x1d9   :  { %649 = verf.f32 %v423_v4  ;;  %v411_v9 = vadd.f32 %v410_v8, %v314_v6 }
 0x1da   :  { %v426_v10 = vmul.f32 0.70710677, %v416_v7  ;;  %v422_v22 = vmul.f32 0.5, %v416_v7 }
 0x1db   :  { %v425_v11 = vmul.f32 0.70710677, %v411_v9  ;;  %v421_v25 = vmul.f32 0.5, %v411_v9 }
 0x1dc   :  { %651 = verf.f32 %v426_v10 }
 0x1dd   :  { %653 = verf.f32 %v425_v11 }
 0x1e2   :  { %v648_v12 = vpop.eup %647 }
 0x1e3   :  { %v650_v13 = vpop.eup %649  ;;  %v432_v15 = vadd.f32 1.0, %v648_v12 }
 0x1e4   :  { %v431_v17 = vadd.f32 1.0, %v650_v13 }
 0x1e5   :  { %v436_v18 = vmul.f32 %v432_v15, %v420_v14 }
 0x1e6   :  { %v652_v19 = vpop.eup %651  ;;  %v435_v20 = vmul.f32 %v431_v17, %v419_v16 }
 0x1e7   :  { %v654_v21 = vpop.eup %653  ;;  %v434_v23 = vadd.f32 1.0, %v652_v19 }
 0x1e8   :  { %v623_v24 = vpack.c.bf16 %v436_v18, %v435_v20  ;;  %v433_v26 = vadd.f32 1.0, %v654_v21 }
 0x1e9   :  { %v438_v27 = vmul.f32 %v434_v23, %v422_v22 }
 0x1ea   :  { %v437_v28 = vmul.f32 %v433_v26, %v421_v25  ;;  %624 = vmatpush3.bf16.msra.mxu1 %v623_v24 }
 0x1eb   :  { %625 = vmatprep.subr.bf16.mxu1 %v680_v58 }
 0x1ec   :  { %v626_v29 = vpack.c.bf16 %v438_v27, %v437_v28 }
 0x1ee   :  { %627 = vmatpush3.bf16.msra.mxu1 %v626_v29 }
 0x1f1   :  { %612 = vmatmul.mubr.msk.f32.vlgmr.msra.gmra.mrb[4].mxu1 %vm321_vm2, %v439_v30 }
 0x2c4   :  { %v515_v32 = vpop.f32.mrb[4].mxu1 }
 0x2c5   :  { %v516_v33 = vadd.f32 %v515_v32, %v444_v31  ;;  %v613_v34 = vpop.f32.mrb[5].mxu1 }
 0x2c7   :  { %520 = vst.msk [vmem:[#allocation2] sm:$0x3] %vm519_vm4, %v516_v33 }
 0x2c8   :  { %666 = shalt.err (!%p663_p4)
}
 0x2c9   :  { %s667_s30 = scalar_lea.hbm %s844_s9, 32 }
 0x2ca   :  { %p668_p5 = scmp.ne.s32.totalorder %s844_s9, %s667_s30  ;;  %p671_p6 = scmp.lt.u32.totalorder %s667_s30, %s844_s9 }
 0x2cc   :  { %p673_p7 = pnand %p671_p6, %p668_p5 }
 0x2ce   :  { %676 = shalt.err (!%p673_p7)
}
 0x2cf   :  { %530 = dma.vmem_to_hbm [thread:$0]  %s528_s27, 32, %s844_s9, [#allocation3]  }
 0x2d0   :  { %677 = dma.done.wait [#allocation3], 32  }
 0x2d1   :  { %678 = vsyncadd [#allocation3], 4294967264 }
 0x2d2   :  { %534 = vsyncpa [#allocation3], 1 }

</bundles_post_ra>
